<compile_context>
chip_gen: v7x
topology: tpu7x:2x2x1
jax: 0.10.0
libtpu: 0.0.40
codegen_flags: <defaults>
</compile_context>

<pallas_src>
import functools

import jax
import jax.numpy as jnp
import numpy as np
from jax.experimental import pallas as pl
from jax.experimental.pallas import tpu as pltpu


# ----------------------------------------------------------------------------
# Pallas kernel: full TemporalBlock forward for one fused batch group.
# ----------------------------------------------------------------------------
def temporal_block_kernel(
    xpad_ref,     # (1, C, pad + G*T)  f32, per-group input, left-zero-padded
    w_ref,        # (2, C, K*C)        bf16, im2col conv weights [conv1, conv2]
    aff_ref,      # (4, C, G*T)        f32, [scale1, shift1, scale2, shift2]
    sew1_ref,     # (Cr, C)            SE fc1 weight
    sew2_ref,     # (C, Cr)            SE fc2 weight
    seb_ref,      # (C, 2)             packed SE biases (col0: fc1 (first Cr), col1: fc2)
    segm_ref,     # (G*T, G)           per-segment mean matrix (entries 1/T)
    seg_ref,      # (G, G*T)           per-segment indicator (gate broadcast)
    o_ref,        # (1, C, G*T)
    ypad_ref,     # scratch (C, pad + G*T) f32 — staging for conv2's shifted reads
    *,
    K, dilation, T, CR,
):
    _, C, BTp = xpad_ref.shape
    pad = (K - 1) * dilation
    BT = BTp - pad

    # column index modulo the (unfused) sequence length; used to zero the
    # causally-invalid head columns of every length-T batch segment.
    tmod = jax.lax.broadcasted_iota(jnp.int32, (C, BT), 1) % T

    def im2col(read):
        # Stack the K causally shifted copies of the input along channels.
        parts = []
        for k in range(K):
            off = k * dilation
            sl = read(off)                       # (C, BT) f32, shifted right by pad-off
            s = pad - off
            if s > 0:
                # zero columns that wrapped in from the previous batch segment
                sl = jnp.where(tmod < s, 0.0, sl)
            parts.append(sl)
        return jnp.concatenate(parts, axis=0).astype(jnp.bfloat16)   # (K*C, BT)

    # ---- conv1 (single MXU dot) -> folded bias/mask/BN -> ReLU (dropout = id) ----
    y = jnp.dot(w_ref[0], im2col(lambda off: xpad_ref[0, :, off:off + BT]),
                preferred_element_type=jnp.float32)
    y = jnp.maximum(y * aff_ref[0] + aff_ref[1], 0.0)

    # ---- conv2: stage y into the left-zero-padded scratch, then same pattern ----
    if pad:
        ypad_ref[:, :pad] = jnp.zeros((C, pad), ypad_ref.dtype)
    ypad_ref[:, pad:] = y
    out = jnp.dot(w_ref[1], im2col(lambda off: ypad_ref[:, off:off + BT]),
                  preferred_element_type=jnp.float32)
    out = jnp.maximum(out * aff_ref[2] + aff_ref[3], 0.0)

    # ---- SE block, batched over the fused segments via segment matmuls ----
    s = jnp.dot(out, segm_ref[...], preferred_element_type=jnp.float32)      # (C, G)
    h = jnp.dot(sew1_ref[...], s, preferred_element_type=jnp.float32) + seb_ref[:CR, 0:1]
    h = jnp.maximum(h, 0.0)                                                   # (Cr, G)
    g = jax.nn.sigmoid(
        jnp.dot(sew2_ref[...], h, preferred_element_type=jnp.float32) + seb_ref[:, 1:2])
    gate = jnp.dot(g, seg_ref[...], preferred_element_type=jnp.float32)       # (C, G*T)

    # ---- residual (downsample is None) + final ReLU ----
    o_ref[0] = jnp.maximum(out * gate + xpad_ref[0, :, pad:], 0.0).astype(o_ref.dtype)


# ----------------------------------------------------------------------------
# Wrapper: parameter folding + batch fusion + pallas_call
# ----------------------------------------------------------------------------
def temporal_block_pallas(x, p, *, kernel_size, dilation, batch_group=None):
    B, C, T = x.shape
    K = kernel_size
    pad = (K - 1) * dilation
    CR = p["se_w1"].shape[0]
    G = B if batch_group is None else batch_group
    assert B % G == 0
    NG = B // G
    BT = G * T

    # --- im2col conv weights: (K, Cout, Cin) -> (Cout, K*Cin), bf16 for the MXU ---
    w1 = jnp.transpose(p["w1"], (1, 0, 2)).reshape(C, K * C)
    w2 = jnp.transpose(p["w2"], (1, 0, 2)).reshape(C, K * C)
    w_cat = jnp.stack([w1, w2]).astype(jnp.bfloat16)                     # (2, C, K*C)

    # --- fold conv bias + sparsify mask + BN into one affine per conv ---
    scale1 = p["m0"] * p["bn1_scale"]                                    # (C, T)
    shift1 = p["b1"] * scale1 + p["bn1_shift"]
    scale2 = p["m1"] * p["bn2_scale"]
    shift2 = p["b2"] * scale2 + p["bn2_shift"]
    aff = jnp.stack([jnp.tile(a, (1, G))
                     for a in (scale1, shift1, scale2, shift2)])          # (4, C, G*T)

    # --- packed SE biases ---
    seb = jnp.zeros((C, 2), jnp.float32)
    seb = seb.at[:CR, 0].set(p["se_b1"][:, 0]).at[:, 1].set(p["se_b2"][:, 0])

    # --- segment matrices for the batched SE squeeze / gate broadcast ---
    seg = jnp.repeat(jnp.eye(G, dtype=jnp.float32), T, axis=1)            # (G, G*T)
    segm = seg.T / T                                                      # (G*T, G)

    # --- fuse batch into lanes and left-zero-pad for the causal shifts ---
    xg = x.reshape(NG, G, C, T).transpose(0, 2, 1, 3).reshape(NG, C, BT)
    xpad = jnp.pad(xg, ((0, 0), (0, 0), (pad, 0)))                        # (NG, C, pad+BT)

    kern = functools.partial(temporal_block_kernel, K=K, dilation=dilation, T=T, CR=CR)
    const2 = lambda shape: pl.BlockSpec(shape, lambda i: (0, 0))
    const3 = lambda shape: pl.BlockSpec(shape, lambda i: (0, 0, 0))

    out_fused = pl.pallas_call(
        kern,
        out_shape=jax.ShapeDtypeStruct((NG, C, BT), x.dtype),
        grid_spec=pltpu.PrefetchScalarGridSpec(
            num_scalar_prefetch=0,
            grid=(NG,),
            in_specs=[
                pl.BlockSpec((1, C, BT + pad), lambda i: (i, 0, 0)),      # xpad
                const3((2, C, K * C)),                                    # conv weights
                const3((4, C, BT)),                                       # folded affines
                const2((CR, C)),                                          # SE fc1 W
                const2((C, CR)),                                          # SE fc2 W
                const2((C, 2)),                                           # SE biases
                const2((BT, G)),                                          # segment mean
                const2((G, BT)),                                          # segment indicator
            ],
            out_specs=pl.BlockSpec((1, C, BT), lambda i: (i, 0, 0)),
            scratch_shapes=[pltpu.VMEM((C, BT + pad), jnp.float32)],
        ),
        compiler_params=pltpu.CompilerParams(dimension_semantics=("parallel",)),
    )(xpad, w_cat, aff, p["se_w1"], p["se_w2"], seb, segm, seg)

    # un-fuse batch: (NG, C, G*T) -> (B, C, T)
    return out_fused.reshape(NG, C, G, T).transpose(0, 2, 1, 3).reshape(B, C, T)


# ----------------------------------------------------------------------------
# Parameter setup (glue, plain JAX)
# ----------------------------------------------------------------------------
def weight_norm_effective(v, g):
    # torch.nn.utils.weight_norm with dim=0: w = g * v / ||v||  (norm over dims 1,2)
    norm = jnp.sqrt(jnp.sum(v * v, axis=(1, 2), keepdims=True))
    return g[:, None, None] * v / norm


def sparsify_jax(m, seq_len, num_filters, level):
    # Forward value of sparsify(): hard one-hot per window via straight-through.
    wsize = 2 ** level
    nwin = seq_len // wsize
    w = m.reshape(num_filters, nwin, wsize)
    w4 = w ** 4
    y = w4 / jnp.sum(w4, axis=-1, keepdims=True)          # sharp_softmax, gamma=4
    y_hard = jax.nn.one_hot(jnp.argmax(y, axis=-1), wsize, dtype=y.dtype)
    y_st = (y_hard - y) + y                                # straight-through forward
    return y_st.reshape(num_filters, seq_len)


# ----------------------------------------------------------------------------
# Pure-JAX reference (for correctness check)
# ----------------------------------------------------------------------------
def temporal_block_ref(x, p, *, dilation):
    def causal_conv(inp, w_kcc, bias):
        w = jnp.transpose(w_kcc, (1, 2, 0))                # (Cout, Cin, K)
        pad = (w.shape[-1] - 1) * dilation
        out = jax.lax.conv_general_dilated(
            inp, w, window_strides=(1,), padding=[(pad, 0)],
            rhs_dilation=(dilation,), dimension_numbers=("NCH", "OIH", "NCH"),
        )
        return out + bias[None, :, :]

    y = causal_conv(x, p["w1"], p["b1"])
    y = y * p["m0"][None]
    y = y * p["bn1_scale"][None] + p["bn1_shift"][None]
    y = jnp.maximum(y, 0.0)
    y = causal_conv(y, p["w2"], p["b2"])
    y = y * p["m1"][None]
    y = y * p["bn2_scale"][None] + p["bn2_shift"][None]
    out = jnp.maximum(y, 0.0)
    s = out.mean(axis=2)                                   # (B, C)
    h = jnp.maximum(s @ p["se_w1"].T + p["se_b1"][:, 0], 0.0)
    g = jax.nn.sigmoid(h @ p["se_w2"].T + p["se_b2"][:, 0])
    out = out * g[:, :, None]
    return jnp.maximum(out + x, 0.0)


# ----------------------------------------------------------------------------
if __name__ == "__main__":
    B, C, T = 2, 16, 128          # batch, n_inputs == n_outputs, seq_len
    K, DIL, LEVEL = 3, 2, 1       # kernel_size, dilation, level
    CR = C // 4                   # SE reduction
    EPS = 1e-5

    key = jax.random.PRNGKey(0)
    ks = jax.random.split(key, 12)

    x = jax.random.normal(ks[0], (B, C, T), jnp.float32)

    # weight-normed causal convs (init_weights: normal(0, 0.01))
    v1 = 0.01 * jax.random.normal(ks[1], (C, C, K), jnp.float32)
    g1 = 0.5 + jnp.abs(jax.random.normal(ks[2], (C,), jnp.float32))
    v2 = 0.01 * jax.random.normal(ks[3], (C, C, K), jnp.float32)
    g2 = 0.5 + jnp.abs(jax.random.normal(ks[4], (C,), jnp.float32))
    w1 = jnp.transpose(weight_norm_effective(v1, g1), (2, 0, 1))   # (K, Cout, Cin)
    w2 = jnp.transpose(weight_norm_effective(v2, g2), (2, 0, 1))
    b1 = 0.1 * jax.random.normal(ks[5], (C, 1), jnp.float32)
    b2 = 0.1 * jax.random.normal(ks[6], (C, 1), jnp.float32)

    # sparsify masks (level > 0 path); mask parameter shape (2, nout, seq_len)
    mask_param = jax.random.normal(ks[7], (2, C, T), jnp.float32)
    m0 = sparsify_jax(mask_param[0], T, C, LEVEL)
    m1 = sparsify_jax(mask_param[1], T, C, LEVEL)

    # BatchNorm1d in inference mode with fresh params (gamma=1, beta=0, mean=0, var=1)
    gamma = jnp.ones((C,), jnp.float32)
    beta = jnp.zeros((C,), jnp.float32)
    rmean = jnp.zeros((C,), jnp.float32)
    rvar = jnp.ones((C,), jnp.float32)
    bn_scale = (gamma / jnp.sqrt(rvar + EPS)).reshape(C, 1)
    bn_shift = (beta - rmean * gamma / jnp.sqrt(rvar + EPS)).reshape(C, 1)

    # SE block
    se_w1 = 0.2 * jax.random.normal(ks[8], (CR, C), jnp.float32)
    se_b1 = 0.1 * jax.random.normal(ks[9], (CR, 1), jnp.float32)
    se_w2 = 0.2 * jax.random.normal(ks[10], (C, CR), jnp.float32)
    se_b2 = 0.1 * jax.random.normal(ks[11], (C, 1), jnp.float32)

    params = dict(
        w1=w1, b1=b1, w2=w2, b2=b2, m0=m0, m1=m1,
        bn1_scale=bn_scale, bn1_shift=bn_shift,
        bn2_scale=bn_scale, bn2_shift=bn_shift,
        se_w1=se_w1, se_b1=se_b1, se_w2=se_w2, se_b2=se_b2,
    )

    # TODO(synk): dropout (train-mode stochasticity), train-mode BatchNorm statistics,
    # and the straight-through gradient of gumsharp_softmax are not represented
    # (inference-forward semantics only).

    out = temporal_block_pallas(x, params, kernel_size=K, dilation=DIL)
    out = jax.block_until_ready(out)

    ref = temporal_block_ref(x, params, dilation=DIL)
    np.testing.assert_allclose(np.asarray(out), np.asarray(ref), rtol=1e-2, atol=1e-2)

    print("KERNEL_OK")
</pallas_src>

<mosaic_0001>
module attributes {stable_mosaic.version = 11 : i64} {
  func.func @temporal_block_kernel(%arg0: i32, %arg1: memref<1x16x260xf32, #tpu.memory_space<vmem>>, %arg2: memref<2x16x48xbf16, #tpu.memory_space<vmem>>, %arg3: memref<4x16x256xf32, #tpu.memory_space<vmem>>, %arg4: memref<4x16xf32, #tpu.memory_space<vmem>>, %arg5: memref<16x4xf32, #tpu.memory_space<vmem>>, %arg6: memref<16x2xf32, #tpu.memory_space<vmem>>, %arg7: memref<256x2xf32, #tpu.memory_space<vmem>>, %arg8: memref<2x256xf32, #tpu.memory_space<vmem>>, %arg9: memref<1x16x256xf32, #tpu.memory_space<vmem>>, %arg10: memref<16x260xf32, #tpu.memory_space<vmem>>) attributes {dimension_semantics = [#tpu.dimension_semantics<parallel>], iteration_bounds = array<i64: 1>, scalar_prefetch = 0 : i64, scratch_operands = 1 : i64, tpu.core_type = #tpu.core_type<tc>, window_params = [{transform_indices = @transform_0, window_bounds = array<i64: 1, 16, 260>}, {pipeline_mode = #tpu.pipeline_mode<synchronous>, transform_indices = @transform_1, window_bounds = array<i64: 2, 16, 48>}, {pipeline_mode = #tpu.pipeline_mode<synchronous>, transform_indices = @transform_2, window_bounds = array<i64: 4, 16, 256>}, {pipeline_mode = #tpu.pipeline_mode<synchronous>, transform_indices = @transform_3, window_bounds = array<i64: 4, 16>}, {pipeline_mode = #tpu.pipeline_mode<synchronous>, transform_indices = @transform_4, window_bounds = array<i64: 16, 4>}, {pipeline_mode = #tpu.pipeline_mode<synchronous>, transform_indices = @transform_5, window_bounds = array<i64: 16, 2>}, {pipeline_mode = #tpu.pipeline_mode<synchronous>, transform_indices = @transform_6, window_bounds = array<i64: 256, 2>}, {pipeline_mode = #tpu.pipeline_mode<synchronous>, transform_indices = @transform_7, window_bounds = array<i64: 2, 256>}, {transform_indices = @transform_8, window_bounds = array<i64: 1, 16, 256>}]} {
    %0 = tpu.iota {dimensions = array<i32: 1>} : vector<16x256xi32>
    %c128_i32 = arith.constant 128 : i32
    %c0_i32 = arith.constant 0 : i32
    %1 = arith.cmpi eq, %c128_i32, %c0_i32 : i32
    %c1_i32 = arith.constant 1 : i32
    %2 = arith.select %1, %c1_i32, %c128_i32 : i32
    %3 = vector.broadcast %2 : i32 to vector<16x256xi32>
    %4 = arith.remsi %0, %3 : vector<16x256xi32>
    %c0_i32_0 = arith.constant 0 : i32
    %5 = vector.broadcast %c0_i32_0 : i32 to vector<16x256xi32>
    %6 = arith.cmpi ne, %4, %5 : vector<16x256xi32>
    %c0_i32_1 = arith.constant 0 : i32
    %7 = vector.broadcast %c0_i32_1 : i32 to vector<16x256xi32>
    %8 = arith.cmpi slt, %4, %7 : vector<16x256xi32>
    %c0_i32_2 = arith.constant 0 : i32
    %9 = arith.cmpi slt, %2, %c0_i32_2 : i32
    %10 = vector.broadcast %9 : i1 to vector<16x256xi1>
    %11 = vector.broadcast %10 : vector<16x256xi1> to vector<16x256xi1>
    %12 = arith.xori %8, %11 : vector<16x256xi1>
    %13 = arith.andi %12, %6 : vector<16x256xi1>
    %14 = vector.broadcast %2 : i32 to vector<16x256xi32>
    %15 = arith.addi %4, %14 : vector<16x256xi32>
    %16 = arith.select %13, %15, %4 : vector<16x256xi1>, vector<16x256xi32>
    %c0 = arith.constant 0 : index
    %c0_3 = arith.constant 0 : index
    %c0_4 = arith.constant 0 : index
    %17 = vector.load %arg2[%c0, %c0_3, %c0_4] : memref<2x16x48xbf16, #tpu.memory_space<vmem>>, vector<1x16x48xbf16>
    %18 = vector.shape_cast %17 : vector<1x16x48xbf16> to vector<16x48xbf16>
    %c0_5 = arith.constant 0 : index
    %c0_6 = arith.constant 0 : index
    %c0_7 = arith.constant 0 : index
    %19 = vector.load %arg1[%c0_5, %c0_6, %c0_7] : memref<1x16x260xf32, #tpu.memory_space<vmem>>, vector<1x16x256xf32>
    %20 = vector.shape_cast %19 : vector<1x16x256xf32> to vector<16x256xf32>
    %c4_i32 = arith.constant 4 : i32
    %21 = vector.broadcast %c4_i32 : i32 to vector<16x256xi32>
    %22 = arith.cmpi slt, %16, %21 : vector<16x256xi32>
    %cst = arith.constant 0.000000e+00 : f32
    %23 = vector.broadcast %cst : f32 to vector<16x256xf32>
    %24 = arith.select %22, %23, %20 : vector<16x256xi1>, vector<16x256xf32>
    %c0_8 = arith.constant 0 : index
    %c0_9 = arith.constant 0 : index
    %c2 = arith.constant 2 : index
    %25 = vector.load %arg1[%c0_8, %c0_9, %c2] : memref<1x16x260xf32, #tpu.memory_space<vmem>>, vector<1x16x256xf32>
    %26 = vector.shape_cast %25 : vector<1x16x256xf32> to vector<16x256xf32>
    %c2_i32 = arith.constant 2 : i32
    %27 = vector.broadcast %c2_i32 : i32 to vector<16x256xi32>
    %28 = arith.cmpi slt, %16, %27 : vector<16x256xi32>
    %cst_10 = arith.constant 0.000000e+00 : f32
    %29 = vector.broadcast %cst_10 : f32 to vector<16x256xf32>
    %30 = arith.select %28, %29, %26 : vector<16x256xi1>, vector<16x256xf32>
    %c0_11 = arith.constant 0 : index
    %c0_12 = arith.constant 0 : index
    %c4 = arith.constant 4 : index
    %31 = vector.load %arg1[%c0_11, %c0_12, %c4] : memref<1x16x260xf32, #tpu.memory_space<vmem>>, vector<1x16x256xf32>
    %32 = vector.shape_cast %31 : vector<1x16x256xf32> to vector<16x256xf32>
    %33 = tpu.concatenate %24, %30, %32 in 0 : vector<16x256xf32>, vector<16x256xf32>, vector<16x256xf32> -> vector<48x256xf32>
    %34 = arith.truncf %33 : vector<48x256xf32> to vector<48x256xbf16>
    %cst_13 = arith.constant dense<0.000000e+00> : vector<16x256xf32>
    %35 = tpu.matmul %18, %34, %cst_13 {dimension_numbers = #tpu.dot_dimension_numbers<[1], [0], [0], [1], [0, 0, 1, 1], [], []>} : vector<16x48xbf16>, vector<48x256xbf16>, vector<16x256xf32> -> vector<16x256xf32>
    %c0_14 = arith.constant 0 : index
    %c0_15 = arith.constant 0 : index
    %c0_16 = arith.constant 0 : index
    %36 = vector.load %arg3[%c0_14, %c0_15, %c0_16] : memref<4x16x256xf32, #tpu.memory_space<vmem>>, vector<1x16x256xf32>
    %37 = vector.shape_cast %36 : vector<1x16x256xf32> to vector<16x256xf32>
    %38 = arith.mulf %35, %37 : vector<16x256xf32>
    %c1 = arith.constant 1 : index
    %c0_17 = arith.constant 0 : index
    %c0_18 = arith.constant 0 : index
    %39 = vector.load %arg3[%c1, %c0_17, %c0_18] : memref<4x16x256xf32, #tpu.memory_space<vmem>>, vector<1x16x256xf32>
    %40 = vector.shape_cast %39 : vector<1x16x256xf32> to vector<16x256xf32>
    %41 = arith.addf %38, %40 : vector<16x256xf32>
    %cst_19 = arith.constant 0.000000e+00 : f32
    %42 = vector.broadcast %cst_19 : f32 to vector<16x256xf32>
    %43 = arith.maximumf %41, %42 : vector<16x256xf32>
    %cst_20 = arith.constant 0.000000e+00 : f32
    %44 = vector.broadcast %cst_20 : f32 to vector<16x4xf32>
    %c0_21 = arith.constant 0 : index
    %c0_22 = arith.constant 0 : index
    %45 = vector.load %arg10[%c0_21, %c0_22] : memref<16x260xf32, #tpu.memory_space<vmem>>, vector<16x4xf32>
    tpu.vector_store %arg10[%c0_21, %c0_22], %44 {strides = array<i32>} : memref<16x260xf32, #tpu.memory_space<vmem>>, vector<16x4xf32>,
    %c0_23 = arith.constant 0 : index
    %c4_24 = arith.constant 4 : index
    %46 = vector.load %arg10[%c0_23, %c4_24] : memref<16x260xf32, #tpu.memory_space<vmem>>, vector<16x256xf32>
    tpu.vector_store %arg10[%c0_23, %c4_24], %43 {strides = array<i32>} : memref<16x260xf32, #tpu.memory_space<vmem>>, vector<16x256xf32>,
    %c1_25 = arith.constant 1 : index
    %c0_26 = arith.constant 0 : index
    %c0_27 = arith.constant 0 : index
    %47 = vector.load %arg2[%c1_25, %c0_26, %c0_27] : memref<2x16x48xbf16, #tpu.memory_space<vmem>>, vector<1x16x48xbf16>
    %48 = vector.shape_cast %47 : vector<1x16x48xbf16> to vector<16x48xbf16>
    %c0_28 = arith.constant 0 : index
    %c0_29 = arith.constant 0 : index
    %49 = vector.load %arg10[%c0_28, %c0_29] : memref<16x260xf32, #tpu.memory_space<vmem>>, vector<16x256xf32>
    %c4_i32_30 = arith.constant 4 : i32
    %50 = vector.broadcast %c4_i32_30 : i32 to vector<16x256xi32>
    %51 = arith.cmpi slt, %16, %50 : vector<16x256xi32>
    %cst_31 = arith.constant 0.000000e+00 : f32
    %52 = vector.broadcast %cst_31 : f32 to vector<16x256xf32>
    %53 = arith.select %51, %52, %49 : vector<16x256xi1>, vector<16x256xf32>
    %c0_32 = arith.constant 0 : index
    %c2_33 = arith.constant 2 : index
    %54 = vector.load %arg10[%c0_32, %c2_33] : memref<16x260xf32, #tpu.memory_space<vmem>>, vector<16x256xf32>
    %c2_i32_34 = arith.constant 2 : i32
    %55 = vector.broadcast %c2_i32_34 : i32 to vector<16x256xi32>
    %56 = arith.cmpi slt, %16, %55 : vector<16x256xi32>
    %cst_35 = arith.constant 0.000000e+00 : f32
    %57 = vector.broadcast %cst_35 : f32 to vector<16x256xf32>
    %58 = arith.select %56, %57, %54 : vector<16x256xi1>, vector<16x256xf32>
    %c0_36 = arith.constant 0 : index
    %c4_37 = arith.constant 4 : index
    %59 = vector.load %arg10[%c0_36, %c4_37] : memref<16x260xf32, #tpu.memory_space<vmem>>, vector<16x256xf32>
    %60 = tpu.concatenate %53, %58, %59 in 0 : vector<16x256xf32>, vector<16x256xf32>, vector<16x256xf32> -> vector<48x256xf32>
    %61 = arith.truncf %60 : vector<48x256xf32> to vector<48x256xbf16>
    %cst_38 = arith.constant dense<0.000000e+00> : vector<16x256xf32>
    %62 = tpu.matmul %48, %61, %cst_38 {dimension_numbers = #tpu.dot_dimension_numbers<[1], [0], [0], [1], [0, 0, 1, 1], [], []>} : vector<16x48xbf16>, vector<48x256xbf16>, vector<16x256xf32> -> vector<16x256xf32>
    %c2_39 = arith.constant 2 : index
    %c0_40 = arith.constant 0 : index
    %c0_41 = arith.constant 0 : index
    %63 = vector.load %arg3[%c2_39, %c0_40, %c0_41] : memref<4x16x256xf32, #tpu.memory_space<vmem>>, vector<1x16x256xf32>
    %64 = vector.shape_cast %63 : vector<1x16x256xf32> to vector<16x256xf32>
    %65 = arith.mulf %62, %64 : vector<16x256xf32>
    %c3 = arith.constant 3 : index
    %c0_42 = arith.constant 0 : index
    %c0_43 = arith.constant 0 : index
    %66 = vector.load %arg3[%c3, %c0_42, %c0_43] : memref<4x16x256xf32, #tpu.memory_space<vmem>>, vector<1x16x256xf32>
    %67 = vector.shape_cast %66 : vector<1x16x256xf32> to vector<16x256xf32>
    %68 = arith.addf %65, %67 : vector<16x256xf32>
    %cst_44 = arith.constant 0.000000e+00 : f32
    %69 = vector.broadcast %cst_44 : f32 to vector<16x256xf32>
    %70 = arith.maximumf %68, %69 : vector<16x256xf32>
    %c0_45 = arith.constant 0 : index
    %c0_46 = arith.constant 0 : index
    %71 = vector.load %arg7[%c0_45, %c0_46] : memref<256x2xf32, #tpu.memory_space<vmem>>, vector<256x2xf32>
    %cst_47 = arith.constant dense<0.000000e+00> : vector<16x2xf32>
    %72 = tpu.matmul %70, %71, %cst_47 {dimension_numbers = #tpu.dot_dimension_numbers<[1], [0], [0], [1], [0, 0, 1, 1], [], []>} : vector<16x256xf32>, vector<256x2xf32>, vector<16x2xf32> -> vector<16x2xf32>
    %c0_48 = arith.constant 0 : index
    %c0_49 = arith.constant 0 : index
    %73 = vector.load %arg4[%c0_48, %c0_49] : memref<4x16xf32, #tpu.memory_space<vmem>>, vector<4x16xf32>
    %cst_50 = arith.constant dense<0.000000e+00> : vector<4x2xf32>
    %74 = tpu.matmul %73, %72, %cst_50 {dimension_numbers = #tpu.dot_dimension_numbers<[1], [0], [0], [1], [0, 0, 1, 1], [], []>} : vector<4x16xf32>, vector<16x2xf32>, vector<4x2xf32> -> vector<4x2xf32>
    %c0_51 = arith.constant 0 : index
    %c0_52 = arith.constant 0 : index
    %75 = vector.load %arg6[%c0_51, %c0_52] : memref<16x2xf32, #tpu.memory_space<vmem>>, vector<4x1xf32>
    %76 = vector.broadcast %75 : vector<4x1xf32> to vector<4x2xf32>
    %77 = arith.addf %74, %76 : vector<4x2xf32>
    %cst_53 = arith.constant 0.000000e+00 : f32
    %78 = vector.broadcast %cst_53 : f32 to vector<4x2xf32>
    %79 = arith.maximumf %77, %78 : vector<4x2xf32>
    %c0_54 = arith.constant 0 : index
    %c0_55 = arith.constant 0 : index
    %80 = vector.load %arg5[%c0_54, %c0_55] : memref<16x4xf32, #tpu.memory_space<vmem>>, vector<16x4xf32>
    %cst_56 = arith.constant dense<0.000000e+00> : vector<16x2xf32>
    %81 = tpu.matmul %80, %79, %cst_56 {dimension_numbers = #tpu.dot_dimension_numbers<[1], [0], [0], [1], [0, 0, 1, 1], [], []>} : vector<16x4xf32>, vector<4x2xf32>, vector<16x2xf32> -> vector<16x2xf32>
    %c0_57 = arith.constant 0 : index
    %c1_58 = arith.constant 1 : index
    %82 = vector.load %arg6[%c0_57, %c1_58] : memref<16x2xf32, #tpu.memory_space<vmem>>, vector<16x1xf32>
    %83 = vector.broadcast %82 : vector<16x1xf32> to vector<16x2xf32>
    %84 = arith.addf %81, %83 : vector<16x2xf32>
    %85 = arith.negf %84 : vector<16x2xf32>
    %86 = math.exp %85 : vector<16x2xf32>
    %cst_59 = arith.constant 1.000000e+00 : f32
    %87 = vector.broadcast %cst_59 : f32 to vector<16x2xf32>
    %88 = arith.addf %87, %86 : vector<16x2xf32>
    %89 = arith.divf %87, %88 : vector<16x2xf32>
    %c0_60 = arith.constant 0 : index
    %c0_61 = arith.constant 0 : index
    %90 = vector.load %arg8[%c0_60, %c0_61] : memref<2x256xf32, #tpu.memory_space<vmem>>, vector<2x256xf32>
    %cst_62 = arith.constant dense<0.000000e+00> : vector<16x256xf32>
    %91 = tpu.matmul %89, %90, %cst_62 {dimension_numbers = #tpu.dot_dimension_numbers<[1], [0], [0], [1], [0, 0, 1, 1], [], []>} : vector<16x2xf32>, vector<2x256xf32>, vector<16x256xf32> -> vector<16x256xf32>
    %92 = arith.mulf %70, %91 : vector<16x256xf32>
    %c0_63 = arith.constant 0 : index
    %c0_64 = arith.constant 0 : index
    %c4_65 = arith.constant 4 : index
    %93 = vector.load %arg1[%c0_63, %c0_64, %c4_65] : memref<1x16x260xf32, #tpu.memory_space<vmem>>, vector<1x16x256xf32>
    %94 = vector.shape_cast %93 : vector<1x16x256xf32> to vector<16x256xf32>
    %95 = arith.addf %92, %94 : vector<16x256xf32>
    %cst_66 = arith.constant 0.000000e+00 : f32
    %96 = vector.broadcast %cst_66 : f32 to vector<16x256xf32>
    %97 = arith.maximumf %95, %96 : vector<16x256xf32>
    %c0_67 = arith.constant 0 : index
    %c0_68 = arith.constant 0 : index
    %c0_69 = arith.constant 0 : index
    %98 = vector.load %arg9[%c0_67, %c0_68, %c0_69] : memref<1x16x256xf32, #tpu.memory_space<vmem>>, vector<1x16x256xf32>
    %99 = vector.shape_cast %98 : vector<1x16x256xf32> to vector<16x256xf32>
    %100 = vector.shape_cast %97 : vector<16x256xf32> to vector<1x16x256xf32>
    tpu.vector_store %arg9[%c0_67, %c0_68, %c0_69], %100 {strides = array<i32>} : memref<1x16x256xf32, #tpu.memory_space<vmem>>, vector<1x16x256xf32>,
    return
  }
  func.func @transform_0(%arg0: i32) -> (i32, i32, i32) {
    %c0_i32 = arith.constant 0 : i32
    %c0_i32_0 = arith.constant 0 : i32
    %c0_i32_1 = arith.constant 0 : i32
    return %arg0, %c0_i32, %c0_i32_0 : i32, i32, i32
  }
  func.func @transform_1(%arg0: i32) -> (i32, i32, i32) {
    %c0_i32 = arith.constant 0 : i32
    %c0_i32_0 = arith.constant 0 : i32
    %c0_i32_1 = arith.constant 0 : i32
    %c0_i32_2 = arith.constant 0 : i32
    return %c0_i32, %c0_i32_0, %c0_i32_1 : i32, i32, i32
  }
  func.func @transform_2(%arg0: i32) -> (i32, i32, i32) {
    %c0_i32 = arith.constant 0 : i32
    %c0_i32_0 = arith.constant 0 : i32
    %c0_i32_1 = arith.constant 0 : i32
    %c0_i32_2 = arith.constant 0 : i32
    return %c0_i32, %c0_i32_0, %c0_i32_1 : i32, i32, i32
  }
  func.func @transform_3(%arg0: i32) -> (i32, i32) {
    %c0_i32 = arith.constant 0 : i32
    %c0_i32_0 = arith.constant 0 : i32
    %c0_i32_1 = arith.constant 0 : i32
    return %c0_i32, %c0_i32_0 : i32, i32
  }
  func.func @transform_4(%arg0: i32) -> (i32, i32) {
    %c0_i32 = arith.constant 0 : i32
    %c0_i32_0 = arith.constant 0 : i32
    %c0_i32_1 = arith.constant 0 : i32
    return %c0_i32, %c0_i32_0 : i32, i32
  }
  func.func @transform_5(%arg0: i32) -> (i32, i32) {
    %c0_i32 = arith.constant 0 : i32
    %c0_i32_0 = arith.constant 0 : i32
    %c0_i32_1 = arith.constant 0 : i32
    return %c0_i32, %c0_i32_0 : i32, i32
  }
  func.func @transform_6(%arg0: i32) -> (i32, i32) {
    %c0_i32 = arith.constant 0 : i32
    %c0_i32_0 = arith.constant 0 : i32
    %c0_i32_1 = arith.constant 0 : i32
    return %c0_i32, %c0_i32_0 : i32, i32
  }
  func.func @transform_7(%arg0: i32) -> (i32, i32) {
    %c0_i32 = arith.constant 0 : i32
    %c0_i32_0 = arith.constant 0 : i32
    %c0_i32_1 = arith.constant 0 : i32
    return %c0_i32, %c0_i32_0 : i32, i32
  }
  func.func @transform_8(%arg0: i32) -> (i32, i32, i32) {
    %c0_i32 = arith.constant 0 : i32
    %c0_i32_0 = arith.constant 0 : i32
    %c0_i32_1 = arith.constant 0 : i32
    return %arg0, %c0_i32, %c0_i32_0 : i32, i32, i32
  }
}

</mosaic_0001>

<bundles_post_ra>
// kernel: tpu_custom_call.1
= control target key start
LH: loop header
LB: loop body
LE: loop exit
PB: predicated region body
PF: predicated region fallthrough
CT: control target
= control target key end

     0   :  { %v31_v3 = vlaneseq  ;;  %s1112_s17 = smov 126   ;;  %s1528_s0 = inlined_call_operand.vmem [shape: f32[1,16,260], index: 0, kind: input, shape index: {}]   ;;  %s1529_s1 = inlined_call_operand.vmem [shape: bf16[2,16,48], index: 1, kind: input, shape index: {}]   ;;  %s1530_s2 = inlined_call_operand.vmem [shape: f32[4,16,256], index: 2, kind: input, shape index: {}]   ;;  %s1531_s3 = inlined_call_operand.vmem [shape: f32[4,16], index: 3, kind: input, shape index: {}]   ;;  %s1532_s4 = inlined_call_operand.vmem [shape: f32[16,4], index: 4, kind: input, shape index: {}]   ;;  %s1533_s5 = inlined_call_operand.vmem [shape: f32[16,2], index: 5, kind: input, shape index: {}]   ;;  %s1534_s6 = inlined_call_operand.vmem [shape: f32[256,2], index: 6, kind: input, shape index: {}]   ;;  %s1535_s7 = inlined_call_operand.vmem [shape: f32[2,256], index: 7, kind: input, shape index: {}]   ;;  %s1536_s8 = inlined_call_operand.hbm [shape: f32[1,16,256], index: 8, kind: output, shape index: {}]  }
   0x1   :  { %v1171_v0 = vld [vmem:[%s1528_s0 + $0x8] sm:$0xff]  ;;  %v1176_v1 = vld [vmem:[%s1528_s0 + $0x10] sm:$0xff]  ;;  %v1181_v2 = vld [vmem:[%s1528_s0] sm:$0xff] }
   0x2   :  { %v1030_v4 = vpack.i.bf16 %v1176_v1, %v1171_v0  ;;  %v1188_v5 = vld [vmem:[%s1528_s0 + $0x18] sm:$0xff]  ;;  %v1193_v6 = vld [vmem:[%s1528_s0 + $0x20] sm:$0xff]  ;;  %v1198_v7 = vld [vmem:[%s1528_s0 + $0x28] sm:$0xff]  ;;  %v32_v9 = vand.u32 127, %v31_v3 }
   0x3   :  { %v1025_v8 = vpack.i.bf16 %v1188_v5, %v1181_v2  ;;  %v1020_v10 = vpack.i.bf16 %v1198_v7, %v1193_v6 }
   0x4   :  { %1016 = vrot.lane.b32.xlu0 %v1030_v4, %s1112_s17 }
   0x5   :  { %13 = vsyncpa [#allocation4], 0  ;;  %1026 = vrot.lane.b32.xlu1 %v1025_v8, %s1112_s17  ;;  %v33_v11 = vadd.s32 128, %v32_v9  ;;  %vm910_vm0 = vcmp.ge.s32.totalorder %v32_v9, 4  ;;  %v1113_v12 = vmov 0   ;;  %v844_v14 = vpack.c.bf16 %v1193_v6, %v1171_v0  ;;  %s1114_s0 = smov 124  }
   0x6   :  { %173 = vmatprep.mubr.bf16.mxu1 %v1113_v12  ;;  %1075 = vset.pattern.permute.xlu0 %v1113_v12  ;;  %v849_v15 = vpack.c.bf16 %v1188_v5, %v1181_v2  ;;  %vm1216_vm2 = vmpackc.low %vm910_vm0, %vm910_vm0  ;;  %vm92_vm4 = vcmask 1031168   ;;  %vm912_vm6 = vcmp.ge.s32.totalorder %v32_v9, 2  ;;  %vm117_vm9 = vcmask 1014784   ;;  %v1078_v50 = vld [vmem:[%s1529_s1] sm:$0xff]   ;;  %v185_v53 = vld [vmem:[%s1530_s2 + $0x8] sm:$0xff]  ;;  %s1116_s14 = smov 4  }
   0x7   :  { %v45_v13 = vand.u32 127, %v33_v11  ;;  %vm1243_vm8 = vmpackc.low %vm912_vm6, %vm912_vm6  ;;  %vm137_vm10 = vcmask 392192   ;;  %vm205_vm11 = vcmask 31744   ;;  %v1115_v51 = vmov 0.0   ;;  %v184_v52 = vld [vmem:[%s1530_s2] sm:$0xff]  ;;  %v186_v56 = vld [vmem:[%s1530_s2 + $0x10] sm:$0xff] }
   0x8   :  { %1021 = vrot.lane.b32.xlu0 %v1020_v10, %s1112_s17  ;;  %206 = vst.msk [vmem:[#allocation2] sm:$0xff] %vm205_vm11, %v1115_v51  ;;  %207 = vst.msk [vmem:[#allocation2 + $0x18] sm:$0xff] %vm205_vm11, %v1115_v51  ;;  %v862_v55 = vld [vmem:[%s1530_s2 + $0x20] sm:$0xff]  ;;  %v863_v59 = vld [vmem:[%s1530_s2 + $0x28] sm:$0xff]  ;;  %vm228_vm12 = vcmask 1047584   ;;  %vm1118_vm13 = vmmov 0  }
   0x9   :  { %1031 = vrot.lane.b32.xlu1 %v1030_v4, %s1114_s0  ;;  %vm1212_vm1 = vcmp.ge.s32.totalorder %v45_v13, 4  ;;  %vm1232_vm5 = vcmp.ge.s32.totalorder %v45_v13, 2  ;;  %v187_v60 = vld [vmem:[%s1530_s2 + $0x18] sm:$0xff]  ;;  %v864_v63 = vld [vmem:[%s1530_s2 + $0x30] sm:$0xff]  ;;  %v393_v16 = vld [vmem:[%s1534_s6 + $0x80] sm:$0xff]  ;;  %vm491_vm14 = vcmask 130048  }
   0xa   :  { %vm843_vm3 = vmpackc.low %vm1212_vm1, %vm1212_vm1  ;;  %v865_v9 = vld [vmem:[%s1530_s2 + $0x38] sm:$0xff]  ;;  %v1079_v24 = vld [vmem:[%s1529_s1 + $0x8] sm:$0xff]   ;;  %vm586_vm15 = vcmask 1043456   ;;  %vm694_vm0 = vcmask 1041408   ;;  %vm687_vm1 = vcmask 15360  }
   0xb   :  { %845 = vmatprep.subr.msk.bf16.mxu1 %vm843_vm3, %v844_v14  ;;  %vm853_vm7 = vmpackc.low %vm1232_vm5, %vm1232_vm5  ;;  %v405_v38 = vld [vmem:[%s1534_s6 + $0xe0] sm:$0xff] }
   0xc   :  { %1036 = vrot.lane.b32.xlu0 %v1020_v10, %s1114_s0  ;;  %850 = vmatpush1.bf16.msk.msra.mxu1 %vm1216_vm2, %v849_v15 }
   0xd   :  { %1041 = vrot.lane.b32.xlu1 %v1025_v8, %s1114_s0 }
  0x76   :  { %v1017_v18 = vpop.permute.xlu0 %1016 }
  0x77   :  { %v1027_v19 = vpop.permute.xlu1 %1026  ;;  %v1019_v20 = vunpack.i.h.bf16 %v1017_v18  ;;  %v1018_v21 = vunpack.i.l.bf16 %v1017_v18 }
  0x78   :  { %v1028_v22 = vunpack.i.l.bf16 %v1027_v19  ;;  %v1029_v25 = vunpack.i.h.bf16 %v1027_v19 }
  0x79   :  { %v94_v29 = vsel %vm92_vm4, %v1018_v21, %v1019_v20 }
  0x7a   :  { %v1022_v23 = vpop.permute.xlu0 %1021  ;;  %v93_v30 = vsel %vm92_vm4, %v1028_v22, %v1018_v21 }
  0x7b   :  { %v1024_v26 = vunpack.i.h.bf16 %v1022_v23  ;;  %v1023_v27 = vunpack.i.l.bf16 %v1022_v23  ;;  %v1032_v28 = vpop.permute.xlu1 %1031 }
  0x7c   :  { %v1034_v33 = vunpack.i.h.bf16 %v1032_v28  ;;  %v1033_v34 = vunpack.i.l.bf16 %v1032_v28 }
  0x7d   :  { %v95_v31 = vsel %vm92_vm4, %v1029_v25, %v1023_v27  ;;  %v96_v32 = vsel %vm92_vm4, %v1023_v27, %v1024_v26 }
  0x7e   :  { %v854_v35 = vpack.c.bf16 %v96_v32, %v94_v29  ;;  %v859_v36 = vpack.c.bf16 %v95_v31, %v93_v30  ;;  %v1037_v37 = vpop.permute.xlu0 %1036  ;;  %v119_v44 = vsel %vm117_vm9, %v1033_v34, %v1034_v33 }
  0x7f   :  { %v1039_v39 = vunpack.i.h.bf16 %v1037_v37  ;;  %v1038_v40 = vunpack.i.l.bf16 %v1037_v37  ;;  %v1042_v41 = vpop.permute.xlu1 %1041  ;;  %v377_v37 = vld [vmem:[%s1534_s6] sm:$0xff] }
  0x80   :  { %v1044_v42 = vunpack.i.h.bf16 %v1042_v41  ;;  %v1043_v43 = vunpack.i.l.bf16 %v1042_v41  ;;  %855 = vmatprep.subr.msk.bf16.mxu1 %vm853_vm7, %v854_v35 }
  0x81   :  { %860 = vmatpush1.bf16.msk.msra.mxu1 %vm1243_vm8, %v859_v36  ;;  %v121_v45 = vsel %vm117_vm9, %v1038_v40, %v1039_v39  ;;  %v394_v36 = vld [vmem:[%s1534_s6 + $0x88] sm:$0xff] }
  0x82   :  { %v131_v46 = vpack.c.bf16 %v121_v45, %v119_v44  ;;  %v118_v47 = vsel %vm117_vm9, %v1043_v43, %v1033_v34  ;;  %v120_v48 = vsel %vm117_vm9, %v1044_v42, %v1038_v40  ;;  %v969_v17 = vpack.c.bf16 %v394_v36, %v393_v16  ;;  %v378_v39 = vld [vmem:[%s1534_s6 + $0x8] sm:$0xff]  ;;  %v395_v40 = vld [vmem:[%s1534_s6 + $0x90] sm:$0xff]  ;;  %v396_v42 = vld [vmem:[%s1534_s6 + $0x98] sm:$0xff] }
  0x83   :  { %v130_v49 = vpack.c.bf16 %v120_v48, %v118_v47  ;;  %v971_v41 = vpack.c.bf16 %v378_v39, %v377_v37  ;;  %v379_v43 = vld [vmem:[%s1534_s6 + $0x10] sm:$0xff]  ;;  %v380_v44 = vld [vmem:[%s1534_s6 + $0x18] sm:$0xff]  ;;  %v973_v45 = vpack.c.bf16 %v396_v42, %v395_v40  ;;  %v398_v47 = vld [vmem:[%s1534_s6 + $0xa8] sm:$0xff] }
  0x84   :  { %145 = vmatprep.subr.bf16.mxu1 %v131_v46  ;;  %970 = vmatprep.subr.bf16.mxu0 %v969_v17  ;;  %v397_v46 = vld [vmem:[%s1534_s6 + $0xa0] sm:$0xff]  ;;  %v975_v48 = vpack.c.bf16 %v380_v44, %v379_v43 }
  0x85   :  { %146 = vmatpush1.bf16.msra.mxu1 %v130_v49  ;;  %972 = vmatpush3.bf16.msra.mxu0 %v971_v41  ;;  %v977_v49 = vpack.c.bf16 %v398_v47, %v397_v46  ;;  %v406_v46 = vld [vmem:[%s1534_s6 + $0xe8] sm:$0xff] }
  0x86   :  { %974 = vmatprep.subr.bf16.mxu0 %v973_v45  ;;  %v993_v47 = vpack.c.bf16 %v406_v46, %v405_v38 }
  0x88   :  { %861 = vmatmul.mubr.msk.bf16.vlgmr.msra.gmra.mrb[0].mxu1 %vm137_vm10, %v1078_v50  ;;  %v381_v50 = vld [vmem:[%s1534_s6 + $0x20] sm:$0xff] }
  0x89   :  { %344 = vmatprep.mubr.bf16.mxu1 %v1113_v12  ;;  %976 = vmatpush3.bf16.msra.mxu0 %v975_v48  ;;  %v389_v48 = vld [vmem:[%s1534_s6 + $0x60] sm:$0xff] }
  0x8a   :  { %978 = vmatprep.subr.bf16.mxu0 %v977_v49  ;;  %v390_v49 = vld [vmem:[%s1534_s6 + $0x68] sm:$0xff] }
 0x15b   :  { %v175_v54 = vpop.f32.mrb[0].mxu1 }
 0x15c   :  { %v188_v57 = vmul.f32 %v184_v52, %v175_v54  ;;  %v177_v58 = vpop.f32.mrb[1].mxu1  ;;  %v382_v52 = vld [vmem:[%s1534_s6 + $0x28] sm:$0xff]  ;;  %v400_v54 = vld [vmem:[%s1534_s6 + $0xb8] sm:$0xff] }
 0x15d   :  { %v189_v61 = vmul.f32 %v185_v53, %v177_v58  ;;  %v179_v62 = vpop.f32.mrb[2].mxu1  ;;  %v399_v53 = vld [vmem:[%s1534_s6 + $0xb0] sm:$0xff]  ;;  %v384_v58 = vld [vmem:[%s1534_s6 + $0x38] sm:$0xff] }
 0x15e   :  { %v197_v3 = vadd.f32 %v862_v55, %v188_v57  ;;  %v190_v4 = vmul.f32 %v186_v56, %v179_v62  ;;  %v181_v8 = vpop.f32.mrb[3].mxu1  ;;  %v979_v55 = vpack.c.bf16 %v382_v52, %v381_v50  ;;  %v981_v56 = vpack.c.bf16 %v400_v54, %v399_v53  ;;  %v383_v57 = vld [vmem:[%s1534_s6 + $0x30] sm:$0xff]  ;;  %v408_v53 = vld [vmem:[%s1534_s6 + $0xf8] sm:$0xff] }
 0x15f   :  { %v198_v10 = vadd.f32 %v863_v59, %v189_v61  ;;  %v191_v11 = vmul.f32 %v187_v60, %v181_v8  ;;  %v401_v59 = vld [vmem:[%s1534_s6 + $0xc0] sm:$0xff]  ;;  %v402_v60 = vld [vmem:[%s1534_s6 + $0xc8] sm:$0xff]  ;;  %v983_v61 = vpack.c.bf16 %v384_v58, %v383_v57  ;;  %v404_v8 = vld [vmem:[%s1534_s6 + $0xd8] sm:$0xff]  ;;  %v995_v50 = vpack.c.bf16 %v390_v49, %v389_v48 }
 0x160   :  { %v201_v12 = vmax.f32 %v197_v3, 0.0  ;;  %v199_v13 = vadd.f32 %v864_v63, %v190_v4  ;;  %980 = vmatpush3.bf16.msra.mxu0 %v979_v55  ;;  %v985_v62 = vpack.c.bf16 %v402_v60, %v401_v59  ;;  %v385_v63 = vld [vmem:[%s1534_s6 + $0x40] sm:$0xff]  ;;  %v386_v3 = vld [vmem:[%s1534_s6 + $0x48] sm:$0xff]  ;;  %v403_v4 = vld [vmem:[%s1534_s6 + $0xd0] sm:$0xff] }
 0x161   :  { %v202_v14 = vmax.f32 %v198_v10, 0.0  ;;  %v200_v15 = vadd.f32 %v865_v9, %v191_v11  ;;  %982 = vmatprep.subr.bf16.mxu0 %v981_v56  ;;  %v987_v9 = vpack.c.bf16 %v386_v3, %v385_v63  ;;  %v989_v10 = vpack.c.bf16 %v404_v8, %v403_v4  ;;  %v387_v11 = vld [vmem:[%s1534_s6 + $0x50] sm:$0xff]  ;;  %v392_v56 = vld [vmem:[%s1534_s6 + $0x78] sm:$0xff]  ;;  %v890_v58 = vld [vmem:[%s1530_s2 + $0x40] sm:$0xff] }
 0x162   :  { %212 = vrot.lane.b32.xlu0 %v201_v12, %s1116_s14  ;;  %v203_v18 = vmax.f32 %v199_v13, 0.0  ;;  %v388_v12 = vld [vmem:[%s1534_s6 + $0x58] sm:$0xff]  ;;  %v407_v52 = vld [vmem:[%s1534_s6 + $0xf0] sm:$0xff]  ;;  %v891_v59 = vld [vmem:[%s1530_s2 + $0x48] sm:$0xff] }
 0x163   :  { %214 = vrot.lane.b32.xlu1 %v202_v14, %s1116_s14  ;;  %v204_v19 = vmax.f32 %v200_v15, 0.0  ;;  %v991_v13 = vpack.c.bf16 %v388_v12, %v387_v11  ;;  %v997_v54 = vpack.c.bf16 %v408_v53, %v407_v52  ;;  %v391_v55 = vld [vmem:[%s1534_s6 + $0x70] sm:$0xff]  ;;  %v893_v4 = vld [vmem:[%s1530_s2 + $0x58] sm:$0xff]  ;;  %v895_v8 = vld [vmem:[%s1530_s2 + $0x68] sm:$0xff] }
 0x164   :  { %984 = vmatpush3.bf16.msra.mxu0 %v983_v61  ;;  %v999_v57 = vpack.c.bf16 %v392_v56, %v391_v55  ;;  %v894_v61 = vld [vmem:[%s1530_s2 + $0x60] sm:$0xff] }
 0x165   :  { %986 = vmatprep.subr.bf16.mxu0 %v985_v62  ;;  %v892_v62 = vld [vmem:[%s1530_s2 + $0x50] sm:$0xff] }
 0x166   :  { %216 = vrot.lane.b32.xlu0 %v203_v18, %s1116_s14 }
 0x167   :  { %218 = vrot.lane.b32.xlu1 %v204_v19, %s1116_s14 }
 0x168   :  { %988 = vmatpush3.bf16.msra.mxu0 %v987_v9 }
 0x169   :  { %990 = vmatprep.subr.bf16.mxu0 %v989_v10 }
 0x16c   :  { %992 = vmatpush3.bf16.msra.mxu0 %v991_v13 }
 0x16d   :  { %994 = vmatprep.subr.bf16.mxu0 %v993_v47 }
 0x170   :  { %996 = vmatpush3.bf16.msra.mxu0 %v995_v50 }
 0x171   :  { %998 = vmatprep.subr.bf16.mxu0 %v997_v54 }
 0x174   :  { %1000 = vmatpush3.bf16.msra.mxu0 %v999_v57 }
 0x1d4   :  { %v213_v20 = vpop.permute.xlu0 %212 }
 0x1d5   :  { %229 = vst.msk [vmem:[#allocation2] sm:$0xff] %vm228_vm12, %v213_v20  ;;  %v215_v21 = vpop.permute.xlu1 %214 }
 0x1d6   :  { %v220_v22 = vsel %vm205_vm11, %v213_v20, %v215_v21  ;;  %231 = vst.msk [vmem:[#allocation2 + $0x10] sm:$0xff] %vm205_vm11, %v215_v21 }
 0x1d8   :  { %v217_v23 = vpop.permute.xlu0 %216 }
 0x1d9   :  { %232 = vst.msk [vmem:[#allocation2 + $0x18] sm:$0xff] %vm228_vm12, %v217_v23  ;;  %v219_v25 = vpop.permute.xlu1 %218 }
 0x1da   :  { %v221_v26 = vsel %vm205_vm11, %v217_v23, %v219_v25  ;;  %234 = vst.msk [vmem:[#allocation2 + $0x28] sm:$0xff] %vm205_vm11, %v219_v25 }
 0x1db   :  { %v872_v27 = vpack.c.bf16 %v221_v26, %v220_v22 }
 0x1dc   :  { %v238_v30 = vld [vmem:[#allocation2] sm:$0xff] }
 0x1dd   :  { %v246_v28 = vld [vmem:[#allocation2 + $0x10] sm:$0xff]  ;;  %873 = vmatprep.subr.msk.bf16.mxu1 %vm843_vm3, %v872_v27 }
 0x1de   :  { %v1045_v29 = vpack.i.bf16 %v246_v28, %v220_v22 }
 0x1e0   :  { %1046 = vrot.lane.b32.xlu0 %v1045_v29, %s1112_s17  ;;  %v240_v31 = vld [vmem:[#allocation2 + $0x18] sm:$0xff] }
 0x1e1   :  { %v1050_v32 = vpack.i.bf16 %v240_v31, %v238_v30  ;;  %v877_v33 = vpack.c.bf16 %v240_v31, %v238_v30  ;;  %v247_v34 = vld [vmem:[#allocation2 + $0x28] sm:$0xff] }
 0x1e2   :  { %v1055_v35 = vpack.i.bf16 %v247_v34, %v221_v26 }
 0x1e3   :  { %878 = vmatpush1.bf16.msk.msra.mxu1 %vm1216_vm2, %v877_v33 }
 0x1e4   :  { %1051 = vrot.lane.b32.xlu0 %v1050_v32, %s1112_s17  ;;  %1056 = vrot.lane.b32.xlu1 %v1055_v35, %s1112_s17 }
 0x1e8   :  { %1066 = vrot.lane.b32.xlu0 %v1055_v35, %s1114_s0  ;;  %1061 = vrot.lane.b32.xlu1 %v1045_v29, %s1114_s0 }
 0x1ec   :  { %1071 = vrot.lane.b32.xlu1 %v1050_v32, %s1114_s0 }
 0x252   :  { %v1047_v14 = vpop.permute.xlu0 %1046 }
 0x253   :  { %v1049_v15 = vunpack.i.h.bf16 %v1047_v14  ;;  %v1048_v18 = vunpack.i.l.bf16 %v1047_v14  ;;  %v897_v14 = vld [vmem:[%s1530_s2 + $0x78] sm:$0xff] }
 0x255   :  { %v267_v26 = vsel %vm92_vm4, %v1048_v18, %v1049_v15  ;;  %v896_v15 = vld [vmem:[%s1530_s2 + $0x70] sm:$0xff] }
 0x256   :  { %v1052_v19 = vpop.permute.xlu0 %1051  ;;  %v1057_v20 = vpop.permute.xlu1 %1056 }
 0x257   :  { %v1054_v21 = vunpack.i.h.bf16 %v1052_v19  ;;  %v1053_v22 = vunpack.i.l.bf16 %v1052_v19  ;;  %v1059_v23 = vunpack.i.h.bf16 %v1057_v20  ;;  %v1058_v25 = vunpack.i.l.bf16 %v1057_v20 }
 0x259   :  { %v266_v27 = vsel %vm92_vm4, %v1053_v22, %v1048_v18  ;;  %v268_v28 = vsel %vm92_vm4, %v1054_v21, %v1058_v25  ;;  %v269_v29 = vsel %vm92_vm4, %v1058_v25, %v1059_v23 }
 0x25a   :  { %v882_v30 = vpack.c.bf16 %v269_v29, %v267_v26  ;;  %v887_v31 = vpack.c.bf16 %v268_v28, %v266_v27  ;;  %v1067_v32 = vpop.permute.xlu0 %1066  ;;  %v1062_v33 = vpop.permute.xlu1 %1061  ;;  %v1117_v27 = vmov 0.0|0.0   ;;  %v485_v28 = vld [vmem:[%s1533_s5] sm:$0xf] }
 0x25b   :  { %v1069_v34 = vunpack.i.h.bf16 %v1067_v32  ;;  %v1068_v35 = vunpack.i.l.bf16 %v1067_v32  ;;  %v1064_v16 = vunpack.i.h.bf16 %v1062_v33  ;;  %v1063_v36 = vunpack.i.l.bf16 %v1062_v33  ;;  %1001 = vmatprep.subr.bf16.mxu0 %v1117_v27  ;;  %488 = vperm.xlu0 %1075, %v485_v28  }
 0x25c   :  { %883 = vmatprep.subr.msk.bf16.mxu1 %vm853_vm7, %v882_v30 }
 0x25d   :  { %888 = vmatpush1.bf16.msk.msra.mxu1 %vm1243_vm8, %v887_v31  ;;  %v291_v37 = vsel %vm117_vm9, %v1063_v36, %v1064_v16  ;;  %v293_v17 = vsel %vm117_vm9, %v1068_v35, %v1069_v34  ;;  %v484_v16 = vld [vmem:[%s1531_s3] sm:$0xf] }
 0x25e   :  { %v1072_v39 = vpop.permute.xlu1 %1071  ;;  %v303_v40 = vpack.c.bf16 %v293_v17, %v291_v37 }
 0x25f   :  { %v1074_v41 = vunpack.i.h.bf16 %v1072_v39  ;;  %v1073_v42 = vunpack.i.l.bf16 %v1072_v39  ;;  %792 = vrot.lane.b32.xlu0 %v1181_v2, %s1114_s0  ;;  %v568_v2 = vld [vmem:[%s1533_s5] sm:$0xff] }
 0x260   :  { %316 = vmatprep.subr.bf16.mxu1 %v303_v40 }
 0x261   :  { %v292_v43 = vsel %vm117_vm9, %v1074_v41, %v1068_v35  ;;  %v290_v44 = vsel %vm117_vm9, %v1073_v42, %v1063_v36  ;;  %v569_v36 = vld [vmem:[%s1533_s5 + $0x8] sm:$0xff] }
 0x262   :  { %v302_v45 = vpack.c.bf16 %v292_v43, %v290_v44  ;;  %v567_v42 = vld [vmem:[%s1532_s4 + $0x8] sm:$0xff] }
 0x263   :  { %796 = vrot.lane.b32.xlu0 %v1176_v1, %s1114_s0  ;;  %v566_v1 = vld [vmem:[%s1532_s4] sm:$0xff]  ;;  %s1120_s4 = smov [#allocation3]  }
 0x264   :  { %317 = vmatpush1.bf16.msra.mxu1 %v302_v45 }
 0x267   :  { %889 = vmatmul.mubr.msk.bf16.vlgmr.msra.gmra.mrb[4].mxu1 %vm137_vm10, %v1079_v24  ;;  %800 = vrot.lane.b32.xlu0 %v1193_v6, %s1114_s0  ;;  %v1119_v6 = vmov 1  }
 0x268   :  { %966 = vmatprep.mubr.msk.f32.mxu1 %vm205_vm11, %v566_v1  ;;  %1076 = vset.pattern.permute.xlu1 %v1119_v6 }
 0x269   :  { %1077 = vset.pattern.permute.xlu0 %v1119_v6  ;;  %572 = vperm.xlu1 %1076, %v568_v2  }
 0x26d   :  { %577 = vperm.xlu1 %1076, %v569_v36  }
 0x271   :  { %794 = vrot.lane.b32.xlu1 %v1171_v0, %s1114_s0  ;;  %v904_v0 = vld.sshfl [vmem:[%s1535_s7] sm:$0x33 pattern:$0x76325410]  ;;  %s829_s7 = sshll.u32 %s1120_s4, 4  ;;  %s830_s7 = int_to_ptr.vmem [resolvable:$true] %s829_s7 }
 0x272   :  { %p1093_p1 = scmp.lt.s32.totalorder %s830_s7, %s830_s7 }
 0x275   :  { %798 = vrot.lane.b32.xlu1 %v1188_v5, %s1114_s0  ;;  %v686_v5 = vcombine.high %v904_v0, %v904_v0 }
 0x279   :  { %802 = vrot.lane.b32.xlu1 %v1198_v7, %s1114_s0  ;;  %s1088_s0 = scalar_lea.vmem %s830_s7, 512 }
 0x27a   :  { %p1089_p0 = scmp.ne.s32.totalorder %s830_s7, %s1088_s0  ;;  %p1094_p2 = scmp.lt.s32.totalorder %s1088_s0, %s1088_s0 }
 0x27c   :  { %p1095_p3 = por %p1094_p2, %p1093_p1 }
 0x27e   :  { %p1096_p4 = pnand %p1095_p3, %p1089_p0 }
 0x2da   :  { %v489_v37 = vpop.permute.xlu0 %488 }
 0x2de   :  { %v793_v56 = vpop.permute.xlu0 %792 }
 0x2e8   :  { %v573_v7 = vpop.permute.xlu1 %572 }
 0x2ec   :  { %v578_v43 = vpop.permute.xlu1 %577 }
 0x2f0   :  { %v795_v55 = vpop.permute.xlu1 %794 }
 0x2f4   :  { %v799_v57 = vpop.permute.xlu1 %798 }
 0x33a   :  { %v346_v60 = vpop.f32.mrb[4].mxu1 }
 0x33b   :  { %v360_v63 = vmul.f32 %v890_v58, %v346_v60  ;;  %v348_v3 = vpop.f32.mrb[5].mxu1  ;;  %v797_v58 = vpop.permute.xlu0 %796 }
 0x33c   :  { %v361_v9 = vmul.f32 %v891_v59, %v348_v3  ;;  %v350_v10 = vpop.f32.mrb[6].mxu1  ;;  %v803_v3 = vpop.permute.xlu1 %802 }
 0x33d   :  { %v1440_v11 = vadd.f32 %v894_v61, %v360_v63  ;;  %v362_v12 = vmul.f32 %v892_v62, %v350_v10  ;;  %v352_v13 = vpop.f32.mrb[7].mxu1  ;;  %v804_v62 = vsel %vm117_vm9, %v793_v56, %v795_v55 }
 0x33e   :  { %v363_v18 = vmul.f32 %v893_v4, %v352_v13  ;;  %v1448_v19 = vadd.f32 %v895_v8, %v361_v9 }
 0x33f   :  { %v373_v22 = vmax.f32 %v1440_v11, 0.0  ;;  %v1454_v23 = vadd.f32 %v896_v15, %v362_v12  ;;  %v801_v8 = vpop.permute.xlu0 %800 }
 0x340   :  { %v1450_v20 = vadd.f32 %v897_v14, %v363_v18  ;;  %v374_v21 = vmax.f32 %v1448_v19, 0.0  ;;  %v807_v11 = vsel %vm117_vm9, %v801_v8, %v803_v3  ;;  %v806_v18 = vsel %vm117_vm9, %v799_v57, %v801_v8 }
 0x341   :  { %v375_v26 = vmax.f32 %v1454_v23, 0.0 }
 0x342   :  { %v376_v25 = vmax.f32 %v1450_v20, 0.0  ;;  %473 = vmatprep.mubr.f32.mxu0 %v374_v21 }
 0x343   :  { %474 = vmatmul.mubr.f32.vlgmr.msra.gmra.mrb[0].mxu0 %v373_v22 }
 0x344   :  { %478 = vmatprep.mubr.f32.mxu0 %v376_v25 }
 0x347   :  { %479 = vmatmul.mubr.f32.gmra.mrb[2].mxu0 %v375_v26 }
 0x348   :  { %961 = vmatprep.mubr.msk.f32.mxu0 %vm1118_vm13, %v1115_v51 }
 0x416   :  { %v945_v29 = vpop.f32.mrb[0].mxu0 }
 0x417   :  { %v946_v30 = vpop.f32.mrb[1].mxu0 }
 0x418   :  { %v947_v31 = vadd.f32 %v946_v30, %v945_v29 }
 0x41a   :  { %v948_v32 = vpop.f32.mrb[2].mxu0 }
 0x41b   :  { %v949_v33 = vpop.f32.mrb[3].mxu0 }
 0x41c   :  { %v950_v34 = vadd.f32 %v949_v33, %v948_v32 }
 0x41e   :  { %v1002_v35 = vpack.c.bf16 %v950_v34, %v947_v31 }
 0x420   :  { %1003 = vmatpush3.bf16.msra.mxu0 %v1002_v35 }
 0x423   :  { %962 = vmatmul.mubr.msk.f32.vlgmr.msra.gmra.mrb[4].mxu0 %vm491_vm14, %v484_v16 }
 0x4f6   :  { %v561_v17 = vpop.f32.mrb[4].mxu0 }
 0x4f7   :  { %v562_v39 = vadd.f32 %v561_v17, %v489_v37  ;;  %v963_v40 = vpop.f32.mrb[5].mxu0 }
 0x4f9   :  { %v565_v41 = vmax.f32 %v562_v39, 0.0 }
 0x4fb   :  { %964 = vmatprep.subr.msk.mxu1 %vm586_vm15, %v565_v41 }
 0x4fc   :  { %965 = vmatpush3.msk.msra.mxu1 %vm586_vm15, %v565_v41 }
 0x4fd   :  { %967 = vmatmul.mubr.msk.f32.vlgmr.msra.gmra.mrb[8].mxu1 %vm205_vm11, %v567_v42  ;;  %905 = vmatprep.subr.msk.mxu1 %vm694_vm0, %v686_v5 }
 0x4fe   :  { %763 = vmatprep.mubr.f32.mxu1 %v1115_v51  ;;  %906 = vmatpush1.msk.msra.mxu1 %vm694_vm0, %v904_v0 }
 0x5d0   :  { %v968_v44 = vpop.f32.mrb[8].mxu1 }
 0x5d1   :  { %v656_v45 = vpop.f32.mrb[9].mxu1  ;;  %v662_v24 = vadd.f32 %v968_v44, %v578_v43 }
 0x5d2   :  { %v657_v38 = vadd.f32 %v656_v45, %v573_v7 }
 0x5d3   :  { %v903_v46 = vmul.f32 -1.442695, %v662_v24 }
 0x5d4   :  { %v902_v47 = vmul.f32 -1.442695, %v657_v38 }
 0x5d5   :  { %1080 = vpow2.f32 %v903_v46 }
 0x5d6   :  { %1082 = vpow2.f32 %v902_v47 }
 0x5df   :  { %v1081_v48 = vpop.eup %1080 }
 0x5e0   :  { %v1083_v49 = vpop.eup %1082  ;;  %v672_v52 = vadd.f32 1.0, %v1081_v48 }
 0x5e1   :  { %v671_v50 = vadd.f32 1.0, %v1083_v49 }
 0x5e3   :  { %1084 = vrcp.f32 %v671_v50 }
 0x5e4   :  { %1086 = vrcp.f32 %v672_v52 }
 0x5ed   :  { %v1085_v53 = vpop.eup %1084 }
 0x5ee   :  { %907 = vmatmul.mubr.msk.f32.vlgmr.msra.gmra.mrb[10].mxu1 %vm687_vm1, %v1085_v53  ;;  %v1087_v54 = vpop.eup %1086 }
 0x5ef   :  { %769 = vmatprep.mubr.f32.mxu1 %v1115_v51  ;;  %v805_v51 = vsel %vm117_vm9, %v795_v55, %v797_v58 }
 0x5f2   :  { %908 = vmatmul.mubr.msk.f32.gmra.mrb[12].mxu1 %vm687_vm1, %v1087_v54 }
 0x6c1   :  { %v765_v59 = vpop.f32.mrb[10].mxu1 }
 0x6c2   :  { %v776_v60 = vmul.f32 %v765_v59, %v373_v22  ;;  %v767_v61 = vpop.f32.mrb[11].mxu1 }
 0x6c3   :  { %v777_v63 = vmul.f32 %v767_v61, %v374_v21 }
 0x6c4   :  { %v812_v4 = vadd.f32 %v804_v62, %v776_v60 }
 0x6c5   :  { %v813_v9 = vadd.f32 %v805_v51, %v777_v63  ;;  %v771_v10 = vpop.f32.mrb[12].mxu1 }
 0x6c6   :  { %v816_v12 = vmax.f32 %v812_v4, 0.0  ;;  %v778_v13 = vmul.f32 %v771_v10, %v375_v26  ;;  %v773_v14 = vpop.f32.mrb[13].mxu1 }
 0x6c7   :  { %v817_v15 = vmax.f32 %v813_v9, 0.0  ;;  %v779_v19 = vmul.f32 %v773_v14, %v376_v25 }
 0x6c8   :  { %820 = vst [vmem:[#allocation3] sm:$0xff] %v816_v12  ;;  %v814_v21 = vadd.f32 %v806_v18, %v778_v13 }
 0x6c9   :  { %821 = vst [vmem:[#allocation3 + $0x8] sm:$0xff] %v817_v15  ;;  %v815_v22 = vadd.f32 %v807_v11, %v779_v19 }
 0x6ca   :  { %v818_v27 = vmax.f32 %v814_v21, 0.0 }
 0x6cb   :  { %v819_v28 = vmax.f32 %v815_v22, 0.0 }
 0x6cc   :  { %822 = vst [vmem:[#allocation3 + $0x10] sm:$0xff] %v818_v27 }
 0x6cd   :  { %823 = vst [vmem:[#allocation3 + $0x18] sm:$0xff] %v819_v28 }
 0x6ce   :  { %1099 = shalt.err (!%p1096_p4)
}
 0x6cf   :  { %s1100_s20 = scalar_lea.hbm %s1536_s8, 512 }
 0x6d0   :  { %p1101_p5 = scmp.ne.s32.totalorder %s1536_s8, %s1100_s20  ;;  %p1104_p6 = scmp.lt.u32.totalorder %s1100_s20, %s1536_s8 }
 0x6d2   :  { %p1106_p7 = pnand %p1104_p6, %p1101_p5 }
 0x6d4   :  { %1109 = shalt.err (!%p1106_p7)
}
 0x6d5   :  { %s1121_s17 = smov 256   ;;  %s1122_s24 = smov 16  }
 0x6d6   :  { %835 = dma.vmem_to_hbm [thread:$0]  %s830_s7, 512, %s1536_s8, [#allocation4], %s1121_s17, %s1121_s17, %s1122_s24  }
 0x6d7   :  { %1110 = dma.done.wait [#allocation4], 512  }
 0x6d8   :  { %1111 = vsyncadd [#allocation4], 4294966784 }
 0x6d9   :  { %839 = vsyncpa [#allocation4], 1 }

</bundles_post_ra>
